<compile_context>
chip_gen: v5e
topology: v5e:2x2
jax: 0.10.0
libtpu: 0.0.40
codegen_flags: <defaults>
</compile_context>

<pallas_src>
import math
import jax
import jax.numpy as jnp
from jax.experimental import pallas as pl
from jax.experimental.pallas import tpu as pltpu

LEAKY_SLOPE = 0.1   # nn.LeakyReLU(0.1) used by ConvBatchNormReLU(leaky=True)
BN_EPS = 1e-5       # TODO(synk): thread eps/slope from the PyTorch module if non-default.


def _round_up(a, b):
    return (a + b - 1) // b * b


def _cdiv(a, b):
    return (a + b - 1) // b


def _leaky(v, slope=LEAKY_SLOPE):
    return jnp.where(v > 0, v, slope * v)


# ---------------------------------------------------------------------------
# Kernel
# ---------------------------------------------------------------------------
def _make_kernel(nb, slope):
    """Kernel over a block of `nb` batch rows; nb is small (<=8) and static."""

    def kernel(x_ref, y_ref, w1_ref, b1_ref, w2a_ref, w2b_ref, b2_ref, o_ref):
        # Blocks:
        #   x_ref : (nb, C1, tp)   y_ref : (nb, C2, tp)   o_ref : (nb, do, tp)
        #   w1    : (C2, C2)  b1 : (C2, 1)
        #   w2a   : (do, C1)  w2b: (do, C2)  b2 : (do, 1)
        w1 = w1_ref[...]
        b1 = b1_ref[...]
        w2a = w2a_ref[...]
        w2b = w2b_ref[...]
        b2 = b2_ref[...]
        for b in range(nb):  # static unroll (nb <= 8)
            # Up-cast activations so bf16 I/O still accumulates in f32.
            xb = x_ref[b].astype(jnp.float32)
            yb = y_ref[b].astype(jnp.float32)
            # proj1 (BN folded) + LeakyReLU
            t = jnp.dot(w1, yb, preferred_element_type=jnp.float32) + b1
            t = _leaky(t, slope)
            # proj2 on cat([x, t]) == W2a @ x + W2b @ t (split matmul)
            o = (jnp.dot(w2a, xb, preferred_element_type=jnp.float32)
                 + jnp.dot(w2b, t, preferred_element_type=jnp.float32)
                 + b2)
            o_ref[b] = _leaky(o, slope).astype(o_ref.dtype)

    return kernel


# ---------------------------------------------------------------------------
# Tile selection (VMEM-budgeted, megacore-aware)
# ---------------------------------------------------------------------------
def _choose_tiles(N, C1, C2, do, HW, in_itemsize, out_itemsize,
                  tp_target, vmem_budget, nb_cap=8):
    """Pick (pixel_tile tp, batch_block nb).

    * tp is a multiple of 128, as large as the VMEM budget / problem allows
      (amortizes the ~0.35 us/grid-step pipeline overhead).
    * When one pixel tile covers all of HW, fold batch (nb > 1) instead.
    * Keep the total grid at >= 2 steps when possible so both v7x TCs work.
    """
    hw_pad = _round_up(HW, 128)
    # Double-buffered per-lane-column footprint (sublane dims pad to 8).
    per_lane = 2 * ((_round_up(C1, 8) + _round_up(C2, 8)) * in_itemsize
                    + _round_up(do, 8) * out_itemsize)
    tp_budget = max(128, (vmem_budget // per_lane) // 128 * 128)
    tp = min(max(128, _round_up(tp_target, 128)), tp_budget, hw_pad)

    # Megacore: if there is only one batch row and one pixel tile, split the
    # pixel axis so both TensorCores get a grid step.
    if N == 1 and tp >= hw_pad and hw_pad >= 256:
        tp = _round_up(_cdiv(HW, 2), 128)

    nb = 1
    if _cdiv(HW, tp) == 1 and N > 1:
        # Small-HW regime: grow per-step work by folding batch into the block,
        # but keep >= 2 grid steps (N // 2 cap) and stay within the budget.
        nb_budget = max(1, int(vmem_budget // (per_lane * tp)))
        cap = max(1, min(nb_cap, nb_budget, N // 2))
        nb = max(d for d in range(1, cap + 1) if N % d == 0)

    return tp, nb


# ---------------------------------------------------------------------------
# pallas_call wrapper
# ---------------------------------------------------------------------------
def proj_cat_proj_pallas(x_cm, y_cm, w1t, b1t, w2at, w2bt, b2t, *,
                         tp_target=16384, vmem_budget=12 << 20,
                         out_dtype=None, slope=LEAKY_SLOPE):
    """x_cm: (N, C1, HW), y_cm: (N, C2, HW) -> (N, do, HW).

    Pixels live on the lane (last) axis; channels on sublanes.
    """
    N, C1, HW = x_cm.shape
    _, C2, _ = y_cm.shape
    do = w2at.shape[0]
    out_dtype = jnp.dtype(out_dtype if out_dtype is not None else x_cm.dtype)

    tp, nb = _choose_tiles(N, C1, C2, do, HW,
                           in_itemsize=x_cm.dtype.itemsize,
                           out_itemsize=out_dtype.itemsize,
                           tp_target=tp_target, vmem_budget=vmem_budget)
    grid = (N // nb, _cdiv(HW, tp))   # nb divides N; ragged HW is clamped

    kernel = _make_kernel(nb, slope)
    return pl.pallas_call(
        kernel,
        out_shape=jax.ShapeDtypeStruct((N, do, HW), out_dtype),
        grid_spec=pltpu.PrefetchScalarGridSpec(
            num_scalar_prefetch=0,
            grid=grid,
            in_specs=[
                pl.BlockSpec((nb, C1, tp), lambda n, i: (n, 0, i)),   # x
                pl.BlockSpec((nb, C2, tp), lambda n, i: (n, 0, i)),   # y
                pl.BlockSpec((C2, C2), lambda n, i: (0, 0)),          # W1^T
                pl.BlockSpec((C2, 1), lambda n, i: (0, 0)),           # b1
                pl.BlockSpec((do, C1), lambda n, i: (0, 0)),          # W2a^T
                pl.BlockSpec((do, C2), lambda n, i: (0, 0)),          # W2b^T
                pl.BlockSpec((do, 1), lambda n, i: (0, 0)),           # b2
            ],
            out_specs=pl.BlockSpec((nb, do, tp), lambda n, i: (n, 0, i)),
        ),
        compiler_params=pltpu.CompilerParams(
            dimension_semantics=("parallel", "parallel")),
    )(x_cm, y_cm, w1t, b1t, w2at, w2bt, b2t)


# ---------------------------------------------------------------------------
# Parameter preparation (done ONCE, outside the per-call forward)
# ---------------------------------------------------------------------------
def fold_bn(w, gamma, beta, mean, var, eps=BN_EPS):
    """Fold eval-mode BatchNorm2d into a bias-free 1x1 conv.

    w: (C_in, C_out) matmul weight.  Returns (w_folded, bias_folded (1, C_out)).
    """
    scale = gamma / jnp.sqrt(var + eps)          # (C_out,)
    return w * scale[None, :], (beta - mean * scale)[None, :]


def prepare_params(params, C1, *, eps=BN_EPS):
    """Fold BN + transpose weights once; reuse the result for every forward."""
    w1f, b1f = fold_bn(params["w1"], params["g1"], params["be1"],
                       params["m1"], params["v1"], eps)
    w2f, b2f = fold_bn(params["w2"], params["g2"], params["be2"],
                       params["m2"], params["v2"], eps)
    return dict(
        w1t=jnp.transpose(w1f).astype(jnp.float32),            # (C2, C2)
        b1t=jnp.transpose(b1f).astype(jnp.float32),             # (C2, 1)
        w2at=jnp.transpose(w2f[:C1, :]).astype(jnp.float32),    # (do, C1)
        w2bt=jnp.transpose(w2f[C1:, :]).astype(jnp.float32),    # (do, C2)
        b2t=jnp.transpose(b2f).astype(jnp.float32),             # (do, 1)
    )


def proj_cat_proj_forward(x_nchw, y_nchw, prepared, *, io_dtype=None,
                          out_dtype=None, tp_target=16384,
                          vmem_budget=12 << 20, slope=LEAKY_SLOPE):
    """NCHW in / NCHW out, matching the PyTorch module (eval mode).

    io_dtype=jnp.bfloat16 halves HBM traffic (accumulation stays f32).
    """
    N, C1, H, W = x_nchw.shape
    _, C2, _, _ = y_nchw.shape
    HW = H * W
    if io_dtype is not None:
        x_nchw = x_nchw.astype(io_dtype)
        y_nchw = y_nchw.astype(io_dtype)

    # NCHW -> (N, C, H*W): pure reshape, no transpose / extra HBM traffic.
    x_cm = x_nchw.reshape(N, C1, HW)
    y_cm = y_nchw.reshape(N, C2, HW)

    out_cm = proj_cat_proj_pallas(
        x_cm, y_cm,
        prepared["w1t"], prepared["b1t"],
        prepared["w2at"], prepared["w2bt"], prepared["b2t"],
        tp_target=tp_target, vmem_budget=vmem_budget,
        out_dtype=out_dtype, slope=slope)
    do = prepared["w2at"].shape[0]
    return out_cm.reshape(N, do, H, W)   # pure reshape back to NCHW


# ---------------------------------------------------------------------------
# Pure-JAX reference
# ---------------------------------------------------------------------------
def _reference(x_nchw, y_nchw, params, eps=BN_EPS, slope=LEAKY_SLOPE):
    w1f, b1f = fold_bn(params["w1"], params["g1"], params["be1"],
                       params["m1"], params["v1"], eps)
    w2f, b2f = fold_bn(params["w2"], params["g2"], params["be2"],
                       params["m2"], params["v2"], eps)
    t = jnp.einsum("nchw,cd->ndhw", y_nchw, w1f) + b1f[0][None, :, None, None]
    t = _leaky(t, slope)
    cat = jnp.concatenate([x_nchw, t], axis=1)
    o = jnp.einsum("nchw,cd->ndhw", cat, w2f) + b2f[0][None, :, None, None]
    return _leaky(o, slope)


if __name__ == "__main__":
    # Small synthetic configuration: input_1 = 4 (x channels),
    # input_2 = 4 (y channels), do = 32, spatial = 16x16, batch = 2.
    key = jax.random.PRNGKey(0)
    N, C1, C2, do, H, W = 2, 4, 4, 32, 16, 16
    ks = jax.random.split(key, 12)

    x = jax.random.normal(ks[0], (N, C1, H, W), jnp.float32)
    y = jax.random.normal(ks[1], (N, C2, H, W), jnp.float32)

    # 1x1 conv weights as (C_in, C_out) matmul matrices (bias=False convs).
    params = dict(
        w1=jax.random.normal(ks[2], (C2, C2), jnp.float32) / math.sqrt(C2),
        g1=1.0 + 0.1 * jax.random.normal(ks[3], (C2,), jnp.float32),
        be1=0.1 * jax.random.normal(ks[4], (C2,), jnp.float32),
        m1=0.1 * jax.random.normal(ks[5], (C2,), jnp.float32),
        v1=jnp.abs(1.0 + 0.1 * jax.random.normal(ks[6], (C2,), jnp.float32)),
        w2=jax.random.normal(ks[7], (C1 + C2, do), jnp.float32) / math.sqrt(C1 + C2),
        g2=1.0 + 0.1 * jax.random.normal(ks[8], (do,), jnp.float32),
        be2=0.1 * jax.random.normal(ks[9], (do,), jnp.float32),
        m2=0.1 * jax.random.normal(ks[10], (do,), jnp.float32),
        v2=jnp.abs(1.0 + 0.1 * jax.random.normal(ks[11], (do,), jnp.float32)),
    )

    # BN folding + transposes happen once, outside the per-call forward.
    prepared = jax.tree_util.tree_map(jax.block_until_ready,
                                      prepare_params(params, C1))

    fwd_f32 = jax.jit(lambda a, b: proj_cat_proj_forward(a, b, prepared))
    out = jax.block_until_ready(fwd_f32(x, y))
    ref = jax.block_until_ready(_reference(x, y, params))

    assert out.shape == (N, do, H, W), out.shape
    assert jnp.allclose(out, ref, atol=1e-4, rtol=1e-4), \
        float(jnp.max(jnp.abs(out - ref)))

    # bf16 I/O smoke test (halves HBM bytes; f32 accumulation kept in-kernel).
    fwd_bf16 = jax.jit(lambda a, b: proj_cat_proj_forward(
        a, b, prepared, io_dtype=jnp.bfloat16))
    out_bf16 = jax.block_until_ready(fwd_bf16(x, y))
    assert out_bf16.shape == (N, do, H, W), out_bf16.shape
    assert bool(jnp.all(jnp.isfinite(out_bf16.astype(jnp.float32))))

    print("KERNEL_OK")
</pallas_src>

<mosaic_0001>
module attributes {stable_mosaic.version = 11 : i64} {
  func.func @kernel(%arg0: i32, %arg1: i32, %arg2: memref<1x4x256xf32, #tpu.memory_space<vmem>>, %arg3: memref<1x4x256xf32, #tpu.memory_space<vmem>>, %arg4: memref<4x4xf32, #tpu.memory_space<vmem>>, %arg5: memref<4x1xf32, #tpu.memory_space<vmem>>, %arg6: memref<32x4xf32, #tpu.memory_space<vmem>>, %arg7: memref<32x4xf32, #tpu.memory_space<vmem>>, %arg8: memref<32x1xf32, #tpu.memory_space<vmem>>, %arg9: memref<1x32x256xf32, #tpu.memory_space<vmem>>) attributes {dimension_semantics = [#tpu.dimension_semantics<parallel>, #tpu.dimension_semantics<parallel>], iteration_bounds = array<i64: 2, 1>, scalar_prefetch = 0 : i64, scratch_operands = 0 : i64, tpu.core_type = #tpu.core_type<tc>, window_params = [{transform_indices = @transform_0, window_bounds = array<i64: 1, 4, 256>}, {transform_indices = @transform_1, window_bounds = array<i64: 1, 4, 256>}, {pipeline_mode = #tpu.pipeline_mode<synchronous>, transform_indices = @transform_2, window_bounds = array<i64: 4, 4>}, {pipeline_mode = #tpu.pipeline_mode<synchronous>, transform_indices = @transform_3, window_bounds = array<i64: 4, 1>}, {pipeline_mode = #tpu.pipeline_mode<synchronous>, transform_indices = @transform_4, window_bounds = array<i64: 32, 4>}, {pipeline_mode = #tpu.pipeline_mode<synchronous>, transform_indices = @transform_5, window_bounds = array<i64: 32, 4>}, {pipeline_mode = #tpu.pipeline_mode<synchronous>, transform_indices = @transform_6, window_bounds = array<i64: 32, 1>}, {transform_indices = @transform_7, window_bounds = array<i64: 1, 32, 256>}]} {
    %c0 = arith.constant 0 : index
    %c0_0 = arith.constant 0 : index
    %0 = vector.load %arg4[%c0, %c0_0] : memref<4x4xf32, #tpu.memory_space<vmem>>, vector<4x4xf32>
    %c0_1 = arith.constant 0 : index
    %c0_2 = arith.constant 0 : index
    %1 = vector.load %arg5[%c0_1, %c0_2] : memref<4x1xf32, #tpu.memory_space<vmem>>, vector<4x1xf32>
    %c0_3 = arith.constant 0 : index
    %c0_4 = arith.constant 0 : index
    %2 = vector.load %arg6[%c0_3, %c0_4] : memref<32x4xf32, #tpu.memory_space<vmem>>, vector<32x4xf32>
    %c0_5 = arith.constant 0 : index
    %c0_6 = arith.constant 0 : index
    %3 = vector.load %arg7[%c0_5, %c0_6] : memref<32x4xf32, #tpu.memory_space<vmem>>, vector<32x4xf32>
    %c0_7 = arith.constant 0 : index
    %c0_8 = arith.constant 0 : index
    %4 = vector.load %arg8[%c0_7, %c0_8] : memref<32x1xf32, #tpu.memory_space<vmem>>, vector<32x1xf32>
    %c0_9 = arith.constant 0 : index
    %c0_10 = arith.constant 0 : index
    %c0_11 = arith.constant 0 : index
    %5 = vector.load %arg2[%c0_9, %c0_10, %c0_11] : memref<1x4x256xf32, #tpu.memory_space<vmem>>, vector<1x4x256xf32>
    %6 = vector.shape_cast %5 : vector<1x4x256xf32> to vector<4x256xf32>
    %c0_12 = arith.constant 0 : index
    %c0_13 = arith.constant 0 : index
    %c0_14 = arith.constant 0 : index
    %7 = vector.load %arg3[%c0_12, %c0_13, %c0_14] : memref<1x4x256xf32, #tpu.memory_space<vmem>>, vector<1x4x256xf32>
    %8 = vector.shape_cast %7 : vector<1x4x256xf32> to vector<4x256xf32>
    %cst = arith.constant dense<0.000000e+00> : vector<4x256xf32>
    %9 = tpu.matmul %0, %8, %cst {dimension_numbers = #tpu.dot_dimension_numbers<[1], [0], [0], [1], [0, 0, 1, 1], [], []>} : vector<4x4xf32>, vector<4x256xf32>, vector<4x256xf32> -> vector<4x256xf32>
    %10 = vector.broadcast %1 : vector<4x1xf32> to vector<4x256xf32>
    %11 = arith.addf %9, %10 : vector<4x256xf32>
    %cst_15 = arith.constant 0.000000e+00 : f32
    %12 = vector.broadcast %cst_15 : f32 to vector<4x256xf32>
    %13 = arith.cmpf ogt, %11, %12 : vector<4x256xf32>
    %cst_16 = arith.constant 1.000000e-01 : f32
    %14 = vector.broadcast %cst_16 : f32 to vector<4x256xf32>
    %15 = arith.mulf %14, %11 : vector<4x256xf32>
    %16 = arith.select %13, %11, %15 : vector<4x256xi1>, vector<4x256xf32>
    %cst_17 = arith.constant dense<0.000000e+00> : vector<32x256xf32>
    %17 = tpu.matmul %2, %6, %cst_17 {dimension_numbers = #tpu.dot_dimension_numbers<[1], [0], [0], [1], [0, 0, 1, 1], [], []>} : vector<32x4xf32>, vector<4x256xf32>, vector<32x256xf32> -> vector<32x256xf32>
    %cst_18 = arith.constant dense<0.000000e+00> : vector<32x256xf32>
    %18 = tpu.matmul %3, %16, %cst_18 {dimension_numbers = #tpu.dot_dimension_numbers<[1], [0], [0], [1], [0, 0, 1, 1], [], []>} : vector<32x4xf32>, vector<4x256xf32>, vector<32x256xf32> -> vector<32x256xf32>
    %19 = arith.addf %17, %18 : vector<32x256xf32>
    %20 = vector.broadcast %4 : vector<32x1xf32> to vector<32x256xf32>
    %21 = arith.addf %19, %20 : vector<32x256xf32>
    %cst_19 = arith.constant 0.000000e+00 : f32
    %22 = vector.broadcast %cst_19 : f32 to vector<32x256xf32>
    %23 = arith.cmpf ogt, %21, %22 : vector<32x256xf32>
    %cst_20 = arith.constant 1.000000e-01 : f32
    %24 = vector.broadcast %cst_20 : f32 to vector<32x256xf32>
    %25 = arith.mulf %24, %21 : vector<32x256xf32>
    %26 = arith.select %23, %21, %25 : vector<32x256xi1>, vector<32x256xf32>
    %c0_21 = arith.constant 0 : index
    %c0_22 = arith.constant 0 : index
    %c0_23 = arith.constant 0 : index
    %27 = vector.load %arg9[%c0_21, %c0_22, %c0_23] : memref<1x32x256xf32, #tpu.memory_space<vmem>>, vector<1x32x256xf32>
    %28 = vector.shape_cast %27 : vector<1x32x256xf32> to vector<32x256xf32>
    %29 = vector.shape_cast %26 : vector<32x256xf32> to vector<1x32x256xf32>
    tpu.vector_store %arg9[%c0_21, %c0_22, %c0_23], %29 {strides = array<i32>} : memref<1x32x256xf32, #tpu.memory_space<vmem>>, vector<1x32x256xf32>,
    return
  }
  func.func @transform_0(%arg0: i32, %arg1: i32) -> (i32, i32, i32) {
    %c0_i32 = arith.constant 0 : i32
    %c0_i32_0 = arith.constant 0 : i32
    return %arg0, %c0_i32, %arg1 : i32, i32, i32
  }
  func.func @transform_1(%arg0: i32, %arg1: i32) -> (i32, i32, i32) {
    %c0_i32 = arith.constant 0 : i32
    %c0_i32_0 = arith.constant 0 : i32
    return %arg0, %c0_i32, %arg1 : i32, i32, i32
  }
  func.func @transform_2(%arg0: i32, %arg1: i32) -> (i32, i32) {
    %c0_i32 = arith.constant 0 : i32
    %c0_i32_0 = arith.constant 0 : i32
    %c0_i32_1 = arith.constant 0 : i32
    return %c0_i32, %c0_i32_0 : i32, i32
  }
  func.func @transform_3(%arg0: i32, %arg1: i32) -> (i32, i32) {
    %c0_i32 = arith.constant 0 : i32
    %c0_i32_0 = arith.constant 0 : i32
    %c0_i32_1 = arith.constant 0 : i32
    return %c0_i32, %c0_i32_0 : i32, i32
  }
  func.func @transform_4(%arg0: i32, %arg1: i32) -> (i32, i32) {
    %c0_i32 = arith.constant 0 : i32
    %c0_i32_0 = arith.constant 0 : i32
    %c0_i32_1 = arith.constant 0 : i32
    return %c0_i32, %c0_i32_0 : i32, i32
  }
  func.func @transform_5(%arg0: i32, %arg1: i32) -> (i32, i32) {
    %c0_i32 = arith.constant 0 : i32
    %c0_i32_0 = arith.constant 0 : i32
    %c0_i32_1 = arith.constant 0 : i32
    return %c0_i32, %c0_i32_0 : i32, i32
  }
  func.func @transform_6(%arg0: i32, %arg1: i32) -> (i32, i32) {
    %c0_i32 = arith.constant 0 : i32
    %c0_i32_0 = arith.constant 0 : i32
    %c0_i32_1 = arith.constant 0 : i32
    return %c0_i32, %c0_i32_0 : i32, i32
  }
  func.func @transform_7(%arg0: i32, %arg1: i32) -> (i32, i32, i32) {
    %c0_i32 = arith.constant 0 : i32
    %c0_i32_0 = arith.constant 0 : i32
    return %arg0, %c0_i32, %arg1 : i32, i32, i32
  }
}

</mosaic_0001>

<bundles_post_ra>
// kernel: _lambda_.1
= control target key start
LH: loop header
LB: loop body
LE: loop exit
PB: predicated region body
PF: predicated region fallthrough
CT: control target
= control target key end

     0   :  { %s886_s24 = smov 0   ;;  %s888_s25 = smov 0   ;;  %s1002_s0 = inlined_call_operand.vmem [shape: f32[2,4,256], index: 0, kind: input, shape index: {}]   ;;  %s1003_s1 = inlined_call_operand.vmem [shape: f32[2,4,256], index: 1, kind: input, shape index: {}]   ;;  %s1004_s2 = inlined_call_operand.vmem [shape: f32[4,4], index: 2, kind: input, shape index: {}]   ;;  %s1005_s3 = inlined_call_operand.vmem [shape: f32[4,1], index: 3, kind: input, shape index: {}]   ;;  %s1006_s4 = inlined_call_operand.vmem [shape: f32[32,4], index: 4, kind: input, shape index: {}]   ;;  %s1007_s5 = inlined_call_operand.vmem [shape: f32[32,4], index: 5, kind: input, shape index: {}]   ;;  %s1008_s6 = inlined_call_operand.vmem [shape: f32[32,1], index: 6, kind: input, shape index: {}]   ;;  %s1009_s7 = inlined_call_operand.vmem [shape: f32[2,32,256], index: 7, kind: output, shape index: {}]  }
   0x1   :  { %s890_s26 = smov 0  }
   0x2 LB: > { %s29_s27 = sadd.s32 1, %s839_s25  ;;  %p757_p0 = scmp.ge.s32.totalorder %s843_s26, 1  ;;  %s843_s26 = sphi %s890_s26, %s17_s26   ;;  %s839_s25 = sphi %s888_s25, %s1011_s25   ;;  %s835_s24 = sphi %s886_s24, %s1010_s24  }
   0x3   : > { %p31_p1 = scmp.ge.s32.totalorder %s29_s27, 2  ;;  %p275_p2 = scmp.lt.s32.totalorder %s843_s26, 3 }
   0x5   : > { %s1013_s27 = smov (%p31_p1, %s29_s27), 0  ;;  %p276_p3 = pnand %p757_p0, %p275_p2 }
   0x6   : > { %p325_p4 = scmp.lt.s32.totalorder (!%p276_p3), %s835_s24, 1 }
   0x7   : > { %279 = sbr.rel (%p276_p3) target bundleno = 322 (0x142), region = 48 }
   0xc   : > { %v845_v0 = vmov 0   ;;  %v355_v1 = vld [vmem:[%s1005_s3] sm:$0xf]  ;;  %s1015_s24 = smov (!%p325_p4, %s835_s24), 1  ;;  %vm383_vm0 = vcmask 1043456   ;;  %vm379_vm1 = vcmask 31744  }
   0xd   : > { %818 = vset.pattern.permute.xlu0 %v845_v0  ;;  %819 = vset.pattern.permute.xlu1 %v845_v0  ;;  %s790_s30 = sshll.u32 %s1015_s24, 3  ;;  %v364_v3 = vld [vmem:[%s1008_s6] sm:$0xff]  ;;  %v357_v11 = vld [vmem:[%s1006_s4 + $0x8] sm:$0xff]  ;;  %v358_v12 = vld [vmem:[%s1006_s4 + $0x10] sm:$0xff]  ;;  %s792_s21 = sshll.u32 %s1015_s24, 6 }
   0xe   : > { %372 = vperm.xlu0 %818, %v355_v1   ;;  %820 = vset.pattern.permute.xlu2 %v845_v0  ;;  %s342_s10 = scalar_lea.vmem %s1003_s1, %s790_s30  ;;  %s332_s15 = scalar_lea.vmem %s1002_s0, %s790_s30  ;;  %v354_v5 = vld [vmem:[%s1004_s2] sm:$0xf]  ;;  %v365_v14 = vld [vmem:[%s1008_s6 + $0x8] sm:$0xff]  ;;  %v359_v15 = vld [vmem:[%s1006_s4 + $0x18] sm:$0xff] }
   0xf   : > { %v369_v2 = vld [vmem:[%s342_s10] sm:$0xff]  ;;  %595 = vperm.xlu1 %819, %v365_v14   ;;  %v367_v18 = vld [vmem:[%s1008_s6 + $0x18] sm:$0xff]  ;;  %v366_v26 = vld [vmem:[%s1008_s6 + $0x10] sm:$0xff]  ;;  %s983_s28 = scalar_lea.vmem %s1009_s7, %s792_s21 }
  0x10   : > { %376 = vst [vmem:[#allocation1] ss:$2 sm:$0xff] %v369_v2  ;;  %v368_v4 = vld [vmem:[%s332_s15] sm:$0xff]  ;;  %605 = vperm.xlu2 %820, %v367_v18   ;;  %v361_v27 = vld [vmem:[%s1007_s5 + $0x8] sm:$0xff]  ;;  %v362_v28 = vld [vmem:[%s1007_s5 + $0x10] sm:$0xff] }
  0x11   : > { %v356_v10 = vld [vmem:[%s1006_s4] sm:$0xff]  ;;  %v363_v29 = vld [vmem:[%s1007_s5 + $0x18] sm:$0xff] }
  0x12   : > { %v360_v23 = vld [vmem:[%s1007_s5] sm:$0xff] }
  0x16   : > { %590 = vperm.xlu0 %818, %v364_v3  }
  0x17   : > { %v377_v6 = vld.sshfl [vmem:[#allocation1] sm:$0xff pattern:$0x75316420]  ;;  %v378_v7 = vld.sshfl [vmem:[#allocation1 + $0x8] sm:$0xff pattern:$0x75316420]  ;;  %600 = vperm.xlu1 %819, %v366_v26  }
  0x18   : > { %764 = vmatpush.msk.msra.mxu0 %vm383_vm0, %v377_v6  ;;  %766 = vmatpush.msk.msra.mxu1 %vm383_vm0, %v378_v7  ;;  %511 = vst [vmem:[#allocation1] ss:$2 sm:$0xff] %v368_v4 }
  0x19   : > { %765 = vmatmul.msk.f32.vlgmr.msra.gmra.mxu0 %vm379_vm1, %v354_v5  ;;  %767 = vmatmul.msk.f32.vlgmr.msra.gmra.mxu1 %vm379_vm1, %v354_v5 }
  0x1f   : > { %v512_v8 = vld.sshfl [vmem:[#allocation1] sm:$0xff pattern:$0x75316420]  ;;  %v513_v9 = vld.sshfl [vmem:[#allocation1 + $0x8] sm:$0xff pattern:$0x75316420] }
  0x20   : > { %778 = vmatpush.msk.msrb.mxu0 %vm383_vm0, %v512_v8  ;;  %783 = vmatpush.msk.msrb.mxu1 %vm383_vm0, %v513_v9 }
  0x21   : > { %779 = vmatmul.msk.f32.vlgmr.msrb.gmra.mxu0 %vm379_vm1, %v356_v10  ;;  %784 = vmatmul.msk.f32.vlgmr.msrb.gmra.mxu1 %vm379_vm1, %v356_v10 }
  0x29   : > { %780 = vmatmul.msk.f32.gmra.mxu0 %vm379_vm1, %v357_v11  ;;  %785 = vmatmul.msk.f32.gmra.mxu1 %vm379_vm1, %v357_v11 }
  0x31   : > { %781 = vmatmul.msk.f32.gmra.mxu0 %vm379_vm1, %v358_v12  ;;  %786 = vmatmul.msk.f32.gmra.mxu1 %vm379_vm1, %v358_v12 }
  0x39   : > { %782 = vmatmul.msk.f32.gmra.mxu0 %vm379_vm1, %v359_v15  ;;  %787 = vmatmul.msk.f32.gmra.mxu1 %vm379_vm1, %v359_v15 }
  0x6a   : > { %v606_v7 = vpop.permute.xlu2 %605 }
  0x80   : > { %v373_v13 = vpop.permute.xlu0 %372 }
  0x81   : > { %v596_v43 = vpop.permute.xlu1 %595 }
  0x88   : > { %v591_v34 = vpop.permute.xlu0 %590 }
  0x89   : > { %v601_v58 = vpop.permute.xlu1 %600 }
  0x96   : > { %v405_v16 = vpop.f32.mrf.mxu0  ;;  %v425_v17 = vpop.f32.mrf.mxu1 }
  0x97   : > { %v406_v19 = vadd.f32 %v405_v16, %v373_v13  ;;  %v426_v20 = vadd.f32 %v425_v17, %v373_v13 }
  0x99   : > { %vm428_vm2 = vcmp.gt.f32.partialorder %v406_v19, 0.0  ;;  %v430_v21 = vmul.f32 0.1, %v406_v19  ;;  %vm429_vm3 = vcmp.gt.f32.partialorder %v426_v20, 0.0  ;;  %v431_v22 = vmul.f32 0.1, %v426_v20 }
  0x9b   : > { %v432_v24 = vsel %vm428_vm2, %v406_v19, %v430_v21  ;;  %v433_v25 = vsel %vm429_vm3, %v426_v20, %v431_v22 }
  0x9c   : > { %768 = vmatpush.msk.msra.mxu2 %vm383_vm0, %v432_v24  ;;  %773 = vmatpush.msk.msra.mxu3 %vm383_vm0, %v433_v25 }
  0x9d   : > { %769 = vmatmul.msk.f32.vlgmr.msra.gmra.mxu2 %vm379_vm1, %v360_v23  ;;  %774 = vmatmul.msk.f32.vlgmr.msra.gmra.mxu3 %vm379_vm1, %v360_v23 }
  0x9e   : > { %v547_v30 = vpop.f32.mrf.mxu0  ;;  %v576_v31 = vpop.f32.mrf.mxu1 }
  0xa5   : > { %770 = vmatmul.msk.f32.gmra.mxu2 %vm379_vm1, %v361_v27  ;;  %775 = vmatmul.msk.f32.gmra.mxu3 %vm379_vm1, %v361_v27 }
  0xa6   : > { %v550_v37 = vpop.f32.mrf.mxu0  ;;  %v579_v38 = vpop.f32.mrf.mxu1 }
  0xad   : > { %771 = vmatmul.msk.f32.gmra.mxu2 %vm379_vm1, %v362_v28  ;;  %776 = vmatmul.msk.f32.gmra.mxu3 %vm379_vm1, %v362_v28 }
  0xae   : > { %v553_v52 = vpop.f32.mrf.mxu0  ;;  %v582_v53 = vpop.f32.mrf.mxu1 }
  0xb5   : > { %772 = vmatmul.msk.f32.gmra.mxu2 %vm379_vm1, %v363_v29  ;;  %777 = vmatmul.msk.f32.gmra.mxu3 %vm379_vm1, %v363_v29 }
  0xb6   : > { %v556_v3 = vpop.f32.mrf.mxu0  ;;  %v585_v4 = vpop.f32.mrf.mxu1 }
 0x120   : > { %v469_v32 = vpop.f32.mrf.mxu2  ;;  %v498_v33 = vpop.f32.mrf.mxu3 }
 0x121   : > { %v548_v35 = vadd.f32 %v547_v30, %v469_v32  ;;  %v577_v36 = vadd.f32 %v576_v31, %v498_v33 }
 0x123   : > { %v608_v39 = vadd.f32 %v591_v34, %v548_v35  ;;  %v609_v40 = vadd.f32 %v591_v34, %v577_v36 }
 0x125   : > { %vm616_vm4 = vcmp.gt.f32.partialorder %v608_v39, 0.0  ;;  %v624_v41 = vmul.f32 0.1, %v608_v39  ;;  %vm617_vm5 = vcmp.gt.f32.partialorder %v609_v40, 0.0  ;;  %v625_v42 = vmul.f32 0.1, %v609_v40 }
 0x127   : > { %v632_v44 = vsel %vm616_vm4, %v608_v39, %v624_v41  ;;  %v633_v45 = vsel %vm617_vm5, %v609_v40, %v625_v42 }
 0x128   : > { %640 = vst [vmem:[%s983_s28] sm:$0xff] %v632_v44  ;;  %v472_v46 = vpop.f32.mrf.mxu2  ;;  %v501_v47 = vpop.f32.mrf.mxu3 }
 0x129   : > { %641 = vst [vmem:[%s983_s28 + $0x8] sm:$0xff] %v633_v45  ;;  %v551_v48 = vadd.f32 %v550_v37, %v472_v46  ;;  %v580_v49 = vadd.f32 %v579_v38, %v501_v47 }
 0x12b   : > { %v610_v50 = vadd.f32 %v596_v43, %v551_v48  ;;  %v611_v51 = vadd.f32 %v596_v43, %v580_v49 }
 0x12d   : > { %vm618_vm6 = vcmp.gt.f32.partialorder %v610_v50, 0.0  ;;  %vm619_vm7 = vcmp.gt.f32.partialorder %v611_v51, 0.0  ;;  %v626_v54 = vmul.f32 0.1, %v610_v50  ;;  %v627_v55 = vmul.f32 0.1, %v611_v51 }
 0x12f   : > { %v634_v56 = vsel %vm618_vm6, %v610_v50, %v626_v54  ;;  %v635_v57 = vsel %vm619_vm7, %v611_v51, %v627_v55 }
 0x130   : > { %642 = vst [vmem:[%s983_s28 + $0x10] sm:$0xff] %v634_v56  ;;  %v475_v59 = vpop.f32.mrf.mxu2  ;;  %v504_v60 = vpop.f32.mrf.mxu3 }
 0x131   : > { %643 = vst [vmem:[%s983_s28 + $0x18] sm:$0xff] %v635_v57  ;;  %v554_v61 = vadd.f32 %v553_v52, %v475_v59  ;;  %v583_v62 = vadd.f32 %v582_v53, %v504_v60 }
 0x133   : > { %v612_v63 = vadd.f32 %v601_v58, %v554_v61  ;;  %v613_v0 = vadd.f32 %v601_v58, %v583_v62 }
 0x135   : > { %vm620_vm8 = vcmp.gt.f32.partialorder %v612_v63, 0.0  ;;  %vm621_vm9 = vcmp.gt.f32.partialorder %v613_v0, 0.0  ;;  %v628_v1 = vmul.f32 0.1, %v612_v63  ;;  %v629_v2 = vmul.f32 0.1, %v613_v0 }
 0x137   : > { %v636_v5 = vsel %vm620_vm8, %v612_v63, %v628_v1  ;;  %v637_v6 = vsel %vm621_vm9, %v613_v0, %v629_v2 }
 0x138   : > { %644 = vst [vmem:[%s983_s28 + $0x20] sm:$0xff] %v636_v5  ;;  %v478_v8 = vpop.f32.mrf.mxu2  ;;  %v507_v9 = vpop.f32.mrf.mxu3 }
 0x139   : > { %645 = vst [vmem:[%s983_s28 + $0x28] sm:$0xff] %v637_v6  ;;  %v557_v10 = vadd.f32 %v556_v3, %v478_v8  ;;  %v586_v11 = vadd.f32 %v585_v4, %v507_v9 }
 0x13b   : > { %v614_v12 = vadd.f32 %v606_v7, %v557_v10  ;;  %v615_v13 = vadd.f32 %v606_v7, %v586_v11 }
 0x13d   : > { %vm622_vm10 = vcmp.gt.f32.partialorder %v614_v12, 0.0  ;;  %vm623_vm11 = vcmp.gt.f32.partialorder %v615_v13, 0.0  ;;  %v630_v14 = vmul.f32 0.1, %v614_v12  ;;  %v631_v15 = vmul.f32 0.1, %v615_v13 }
 0x13f   : > { %v638_v16 = vsel %vm622_vm10, %v614_v12, %v630_v14  ;;  %v639_v17 = vsel %vm623_vm11, %v615_v13, %v631_v15 }
 0x140   : > { %646 = vst [vmem:[%s983_s28 + $0x30] sm:$0xff] %v638_v16 }
 0x141   : > { %647 = vst [vmem:[%s983_s28 + $0x38] sm:$0xff] %v639_v17 }
 0x142 PF: > { %s17_s26 = sadd.s32 1, %s843_s26   ;;  %s1010_s24 = smov %s839_s25 }
 0x143   : > { %p14_p5 = scmp.ge.s32.totalorder %s17_s26, 4   ;;  %s1011_s25 = smov %s1013_s27 }
 0x145   :  { %16 = sbr.rel (!%p14_p5) target bundleno = 2 (0x2), region = 81 }

</bundles_post_ra>
